<compile_context>
chip_gen: v5e
topology: v5e:2x2
jax: 0.10.0
libtpu: 0.0.40
codegen_flags: <defaults>
</compile_context>

<pallas_src>
import jax
import jax.numpy as jnp
from jax.experimental import pallas as pl
from jax.experimental.pallas import tpu as pltpu

LANES = 128
SUBLANES = 8


def _vmem_capacity_bytes():
    """Physical VMEM bytes for the local chip (fallback: 128 MiB)."""
    try:
        return int(pltpu.get_tpu_info().vmem_capacity_bytes)
    except Exception:
        return 128 << 20


def _pick_block_rows(itemsize, vmem_bytes):
    """Rows per block so 2 inputs x 2 pipeline buffers + f32 temporaries fit.

    Budget ~1/8 of physical VMEM for the double-buffered input tiles; the
    in-kernel f32 casts / sigmoid / product temporaries then still leave
    ample headroom under the explicit vmem_limit_bytes below.
      v5e/v6e (128 MiB): 8192 rows (f32 or bf16, clamped).
      v7x     ( 64 MiB): 4096 rows f32 / 8192 rows bf16.
    """
    tile_budget = vmem_bytes // 8
    rows = tile_budget // (4 * LANES * itemsize)   # 2 inputs x 2 buffers
    rows = max(1024, min(8192, int(rows)))
    return (rows // SUBLANES) * SUBLANES


def _make_kernel(total_rows, block_rows, needs_mask):
    """Kernel for one (block_rows, 128) block -> (1, 2, 128) partial sums.

    Output row 0 = per-lane sum of (sigmoid(x) + t)   (union term)
           row 1 = per-lane sum of (sigmoid(x) * t)   (intersection)
    The mask branch is only compiled in when the last block is partial.
    """
    def kernel(x_ref, t_ref, o_ref):
        x = x_ref[...].astype(jnp.float32)   # cast in-kernel (v5e has no bf16 VPU/EUP)
        t = t_ref[...].astype(jnp.float32)
        s = jax.nn.sigmoid(x)
        if needs_mask:
            i = pl.program_id(0)
            valid = total_rows - i * block_rows          # >= block_rows except last block
            row = jax.lax.broadcasted_iota(jnp.int32, s.shape, 0)
            keep = row < valid
            s = jnp.where(keep, s, 0.0)
            t = jnp.where(keep, t, 0.0)
        union_lane = jnp.sum(s + t, axis=0, keepdims=True)   # (1, 128)
        inter_lane = jnp.sum(s * t, axis=0, keepdims=True)   # (1, 128)
        # Single lane-dense store; no zero-fill of unused sublanes.
        o_ref[0, :, :] = jnp.concatenate([union_lane, inter_lane], axis=0)
    return kernel


def _tail_sums_jax(x_flat, t_flat):
    """Plain-JAX partial sums for the sub-128-element lane remainder."""
    s = jax.nn.sigmoid(x_flat.astype(jnp.float32))
    t = t_flat.astype(jnp.float32)
    return jnp.sum(s) + jnp.sum(t), jnp.sum(s * t)


def jaccard_loss(inputs, targets, smooth=1.0, *, max_block_rows=None):
    """Pallas TPU implementation of JaccardLoss.forward."""
    total = inputs.size
    x = inputs.reshape(-1)      # native dtype, free reshape
    t = targets.reshape(-1)

    rows = total // LANES
    lane_rem = total - rows * LANES

    union = jnp.float32(0.0)
    inter = jnp.float32(0.0)

    if rows > 0:
        if lane_rem == 0:
            x_main, t_main = x, t                # common case: no copy at all
        else:
            x_main = x[: rows * LANES]           # rare ragged case (< 128 elems cut)
            t_main = t[: rows * LANES]
        x2d = x_main.reshape(rows, LANES)
        t2d = t_main.reshape(rows, LANES)

        itemsize = max(jnp.dtype(x2d.dtype).itemsize, jnp.dtype(t2d.dtype).itemsize)
        vmem_bytes = _vmem_capacity_bytes()
        if max_block_rows is None:
            max_rows = _pick_block_rows(itemsize, vmem_bytes)
        else:
            max_rows = max(SUBLANES, (int(max_block_rows) // SUBLANES) * SUBLANES)

        if rows <= max_rows:
            block_rows = rows                    # single block == full row extent
            n_blocks = 1
            needs_mask = False
        else:
            block_rows = max_rows
            n_blocks = pl.cdiv(rows, block_rows)          # ALL rows go to the kernel
            needs_mask = (rows % block_rows) != 0         # mask only if last block partial

        kernel = _make_kernel(rows, block_rows, needs_mask)

        n_elems = rows * LANES
        cost = pl.CostEstimate(
            flops=5 * n_elems,
            transcendentals=n_elems,
            bytes_accessed=(x2d.size * jnp.dtype(x2d.dtype).itemsize
                            + t2d.size * jnp.dtype(t2d.dtype).itemsize
                            + n_blocks * 2 * LANES * 4),
        )

        parts = pl.pallas_call(
            kernel,
            out_shape=jax.ShapeDtypeStruct((n_blocks, 2, LANES), jnp.float32),
            grid=(n_blocks,),
            in_specs=[
                pl.BlockSpec((block_rows, LANES), lambda i: (i, 0)),
                pl.BlockSpec((block_rows, LANES), lambda i: (i, 0)),
            ],
            out_specs=pl.BlockSpec((1, 2, LANES), lambda i: (i, 0, 0)),
            compiler_params=pltpu.CompilerParams(
                # Independent grid steps -> parallel: lets v7x split the grid
                # across its two TensorCores.
                # TODO(synk): confirm in the Mosaic dump that v7x actually
                # shards this axis; switch to CORE_PARALLEL if it does not.
                dimension_semantics=("parallel",),
                vmem_limit_bytes=min(vmem_bytes // 2, 64 << 20),
            ),
            cost_estimate=cost,
        )(x2d, t2d)

        # Single fused finish: (n_blocks, 2, 128) -> (2,) = [union, inter].
        sums = jnp.sum(parts, axis=(0, 2))
        union = sums[0]
        inter = sums[1]

    if lane_rem:
        # Elements that did not fill a whole 128-lane row (< 128 elements).
        du, di = _tail_sums_jax(x[rows * LANES:], t[rows * LANES:])
        union = union + du
        inter = inter + di

    smooth = jnp.float32(smooth)
    jaccard = (inter + smooth) / (union - inter + smooth)
    return 1.0 - jaccard


def _jaccard_loss_ref(inputs, targets, smooth=1.0):
    s = jax.nn.sigmoid(inputs.astype(jnp.float32)).reshape(-1)
    t = targets.astype(jnp.float32).reshape(-1)
    inter = jnp.sum(s * t)
    jaccard = (inter + smooth) / (jnp.sum(s) + jnp.sum(t) - inter + smooth)
    return 1.0 - jaccard


if __name__ == "__main__":
    key = jax.random.PRNGKey(0)
    k1, k2, k3, k4, k5, k6 = jax.random.split(key, 6)

    loss_fn = jax.jit(jaccard_loss, static_argnames=("max_block_rows",))

    # Test 1: f32 NCHW logits + binary f32 mask (segmentation-style).
    B, C, H, W = 2, 4, 16, 16
    x1 = jax.random.normal(k1, (B, C, H, W), dtype=jnp.float32)
    t1 = (jax.random.uniform(k2, (B, C, H, W)) > 0.5).astype(jnp.float32)
    loss1 = jax.block_until_ready(loss_fn(x1, t1))
    ref1 = _jaccard_loss_ref(x1, t1)
    assert jnp.allclose(loss1, ref1, rtol=1e-5, atol=1e-5), (loss1, ref1)

    # Test 2: native bf16 logits + bf16 binary mask (native-dtype streaming path).
    x2 = jax.random.normal(k3, (2, 8, 16, 16), dtype=jnp.bfloat16)
    t2 = (jax.random.uniform(k4, (2, 8, 16, 16)) > 0.5).astype(jnp.bfloat16)
    loss2 = jax.block_until_ready(loss_fn(x2, t2))
    ref2 = _jaccard_loss_ref(x2, t2)
    assert jnp.allclose(loss2, ref2, rtol=1e-5, atol=1e-5), (loss2, ref2)

    # Test 3: ragged total (1155 elements) forced onto the multi-block masked
    # kernel path (rows=9, block_rows=8 -> 2 blocks, last block partial) plus
    # the <128-element lane tail.
    x3 = jax.random.normal(k5, (3, 5, 7, 11), dtype=jnp.float32)
    t3 = (jax.random.uniform(k6, (3, 5, 7, 11)) > 0.5).astype(jnp.float32)
    loss3 = jax.block_until_ready(loss_fn(x3, t3, max_block_rows=8))
    ref3 = _jaccard_loss_ref(x3, t3)
    assert jnp.allclose(loss3, ref3, rtol=1e-5, atol=1e-5), (loss3, ref3)

    print("KERNEL_OK")
</pallas_src>

<mosaic_0001>
module attributes {stable_mosaic.version = 11 : i64} {
  func.func @kernel(%arg0: i32, %arg1: memref<16x128xf32, #tpu.memory_space<vmem>>, %arg2: memref<16x128xf32, #tpu.memory_space<vmem>>, %arg3: memref<1x2x128xf32, #tpu.memory_space<vmem>>) attributes {dimension_semantics = [#tpu.dimension_semantics<parallel>], iteration_bounds = array<i64: 1>, scalar_prefetch = 0 : i64, scratch_operands = 0 : i64, tpu.core_type = #tpu.core_type<tc>, window_params = [{transform_indices = @transform_0, window_bounds = array<i64: 16, 128>}, {transform_indices = @transform_1, window_bounds = array<i64: 16, 128>}, {transform_indices = @transform_2, window_bounds = array<i64: 1, 2, 128>}]} {
    %c0 = arith.constant 0 : index
    %c0_0 = arith.constant 0 : index
    %0 = vector.load %arg1[%c0, %c0_0] : memref<16x128xf32, #tpu.memory_space<vmem>>, vector<16x128xf32>
    %c0_1 = arith.constant 0 : index
    %c0_2 = arith.constant 0 : index
    %1 = vector.load %arg2[%c0_1, %c0_2] : memref<16x128xf32, #tpu.memory_space<vmem>>, vector<16x128xf32>
    %2 = arith.negf %0 : vector<16x128xf32>
    %3 = math.exp %2 : vector<16x128xf32>
    %cst = arith.constant 1.000000e+00 : f32
    %4 = vector.broadcast %cst : f32 to vector<16x128xf32>
    %5 = arith.addf %4, %3 : vector<16x128xf32>
    %6 = arith.divf %4, %5 : vector<16x128xf32>
    %7 = arith.addf %6, %1 : vector<16x128xf32>
    %cst_3 = arith.constant dense<0.000000e+00> : vector<128xf32>
    %8 = vector.multi_reduction <add>, %7, %cst_3 [0] : vector<16x128xf32> to vector<128xf32>
    %9 = vector.shape_cast %8 : vector<128xf32> to vector<1x128xf32>
    %10 = arith.mulf %6, %1 : vector<16x128xf32>
    %cst_4 = arith.constant dense<0.000000e+00> : vector<128xf32>
    %11 = vector.multi_reduction <add>, %10, %cst_4 [0] : vector<16x128xf32> to vector<128xf32>
    %12 = vector.shape_cast %11 : vector<128xf32> to vector<1x128xf32>
    %13 = tpu.concatenate %9, %12 in 0 : vector<1x128xf32>, vector<1x128xf32> -> vector<2x128xf32>
    %c0_5 = arith.constant 0 : index
    %c0_6 = arith.constant 0 : index
    %c0_7 = arith.constant 0 : index
    %14 = vector.load %arg3[%c0_5, %c0_6, %c0_7] : memref<1x2x128xf32, #tpu.memory_space<vmem>>, vector<1x2x128xf32>
    %15 = vector.shape_cast %14 : vector<1x2x128xf32> to vector<2x128xf32>
    %16 = vector.shape_cast %13 : vector<2x128xf32> to vector<1x2x128xf32>
    tpu.vector_store %arg3[%c0_5, %c0_6, %c0_7], %16 {strides = array<i32>} : memref<1x2x128xf32, #tpu.memory_space<vmem>>, vector<1x2x128xf32>,
    return
  }
  func.func @transform_0(%arg0: i32) -> (i32, i32) {
    %c0_i32 = arith.constant 0 : i32
    %c0_i32_0 = arith.constant 0 : i32
    return %arg0, %c0_i32 : i32, i32
  }
  func.func @transform_1(%arg0: i32) -> (i32, i32) {
    %c0_i32 = arith.constant 0 : i32
    %c0_i32_0 = arith.constant 0 : i32
    return %arg0, %c0_i32 : i32, i32
  }
  func.func @transform_2(%arg0: i32) -> (i32, i32, i32) {
    %c0_i32 = arith.constant 0 : i32
    %c0_i32_0 = arith.constant 0 : i32
    %c0_i32_1 = arith.constant 0 : i32
    return %arg0, %c0_i32, %c0_i32_0 : i32, i32, i32
  }
}

</mosaic_0001>

<bundles_post_ra>
// kernel: jaccard_loss.1
= control target key start
LH: loop header
LB: loop body
LE: loop exit
PB: predicated region body
PF: predicated region fallthrough
CT: control target
= control target key end

     0   :  { %vm71_vm8 = vcmask 1040384   ;;  %s118_s0 = inlined_call_operand.vmem [shape: f32[16,128], index: 0, kind: input, shape index: {}]   ;;  %s119_s1 = inlined_call_operand.vmem [shape: f32[16,128], index: 1, kind: input, shape index: {}]   ;;  %s120_s2 = inlined_call_operand.vmem [shape: f32[1,2,128], index: 2, kind: output, shape index: {}]  }
   0x1   :  { %v11_v0 = vld [vmem:[%s118_s0] sm:$0xff]  ;;  %v12_v1 = vld [vmem:[%s118_s0 + $0x8] sm:$0xff] }
   0x2   :  { %v78_v2 = vmul.f32 -1.442695, %v11_v0  ;;  %v79_v3 = vmul.f32 -1.442695, %v12_v1  ;;  %v13_v23 = vld [vmem:[%s119_s1] sm:$0xff]  ;;  %v14_v25 = vld [vmem:[%s119_s1 + $0x8] sm:$0xff] }
   0x4   :  { %80 = vpow2.f32 %v78_v2 }
   0x5   :  { %82 = vpow2.f32 %v79_v3 }
   0xa   :  { %v81_v4 = vpop.eup %80 }
   0xb   :  { %v83_v5 = vpop.eup %82  ;;  %v21_v6 = vadd.f32 1.0, %v81_v4 }
   0xc   :  { %v22_v7 = vadd.f32 1.0, %v83_v5 }
   0xd   :  { %84 = vrcp.f32 %v21_v6  ;;  %vm28_vm0 = vweird.f32 %v21_v6  ;;  %v34_v11 = vand.u32 2147483648, %v21_v6  ;;  %v32_v14 = vand.u32 2147483647, %v21_v6 }
   0xe   :  { %86 = vrcp.f32 %v22_v7  ;;  %v49_v15 = vand.u32 2147483648, %v22_v7  ;;  %vm43_vm2 = vweird.f32 %v22_v7  ;;  %v47_v17 = vand.u32 2147483647, %v22_v7 }
   0xf   :  { %v35_v19 = vor.u32 1.1754944e-38, %v34_v11  ;;  %vm33_vm5 = vcmp.eq.f32.partialorder %v32_v14, 8.507059e+37 }
  0x10   :  { %v50_v22 = vor.u32 1.1754944e-38, %v49_v15  ;;  %vm48_vm7 = vcmp.eq.f32.partialorder %v47_v17, 8.507059e+37 }
  0x13   :  { %v85_v8 = vpop.eup %84 }
  0x14   :  { %v87_v9 = vpop.eup %86  ;;  %v24_v10 = vmul.f32 %v85_v8, %v21_v6  ;;  %vm29_vm1 = vweird.f32 %v85_v8 }
  0x15   :  { %v39_v12 = vmul.f32 %v87_v9, %v22_v7  ;;  %vm44_vm3 = vweird.f32 %v87_v9  ;;  %vm30_vm4 = vmor %vm28_vm0, %vm29_vm1 }
  0x16   :  { %v25_v13 = vsub.f32 1.0, %v24_v10  ;;  %vm45_vm6 = vmor %vm43_vm2, %vm44_vm3 }
  0x17   :  { %v40_v16 = vsub.f32 1.0, %v39_v12 }
  0x18   :  { %v26_v18 = vmul.f32 %v85_v8, %v25_v13 }
  0x19   :  { %v41_v20 = vmul.f32 %v87_v9, %v40_v16 }
  0x1a   :  { %v27_v21 = vadd.f32 %v85_v8, %v26_v18 }
  0x1b   :  { %v42_v24 = vadd.f32 %v87_v9, %v41_v20 }
  0x1c   :  { %v31_v26 = vsel %vm30_vm4, %v85_v8, %v27_v21 }
  0x1d   :  { %v36_v27 = vsel %vm33_vm5, %v35_v19, %v31_v26  ;;  %v46_v28 = vsel %vm45_vm6, %v87_v9, %v42_v24 }
  0x1e   :  { %v51_v29 = vsel %vm48_vm7, %v50_v22, %v46_v28  ;;  %v53_v30 = vadd.f32 %v36_v27, %v13_v23  ;;  %v62_v31 = vmul.f32 %v36_v27, %v13_v23 }
  0x1f   :  { %v54_v32 = vadd.f32 %v51_v29, %v14_v25  ;;  %v63_v33 = vmul.f32 %v51_v29, %v14_v25 }
  0x21   :  { %v55_v34 = vadd.f32 %v54_v32, %v53_v30  ;;  %v64_v35 = vadd.f32 %v63_v33, %v62_v31 }
  0x23   :  { %v56_v36 = vrot.slane %v55_v34, 4  ;;  %v65_v37 = vrot.slane %v64_v35, 4 }
  0x25   :  { %v57_v38 = vadd.f32 %v56_v36, %v55_v34  ;;  %v66_v39 = vadd.f32 %v65_v37, %v64_v35 }
  0x27   :  { %v58_v40 = vrot.slane %v57_v38, 2  ;;  %v67_v41 = vrot.slane %v66_v39, 2 }
  0x29   :  { %v59_v42 = vadd.f32 %v58_v40, %v57_v38  ;;  %v68_v43 = vadd.f32 %v67_v41, %v66_v39 }
  0x2b   :  { %v60_v44 = vrot.slane %v59_v42, 1  ;;  %v69_v45 = vrot.slane %v68_v43, 1 }
  0x2d   :  { %v61_v46 = vadd.f32 %v60_v44, %v59_v42  ;;  %v70_v47 = vadd.f32 %v69_v45, %v68_v43 }
  0x2f   :  { %v72_v48 = vsel %vm71_vm8, %v61_v46, %v70_v47 }
  0x30   :  { %73 = vst [vmem:[%s120_s2] sm:$0x3] %v72_v48 }

</bundles_post_ra>
